<compile_context>
chip_gen: v5e
topology: v5e:2x2
jax: 0.10.0
libtpu: 0.0.40
codegen_flags: <defaults>
</compile_context>

<pallas_src>
import jax
import jax.numpy as jnp
from jax.experimental import pallas as pl
from jax.experimental.pallas import tpu as pltpu


# ----------------------------------------------------------------------------
# Standalone forward: identical to the PyTorch module — just hand back the
# parameter.  No pallas_call: an HBM->VMEM->HBM copy of a (1, C, 1, 1) tensor
# is 100% overhead (see performance review).
# ----------------------------------------------------------------------------
def implicit_a_forward(implicit: jax.Array) -> jax.Array:
    assert implicit.ndim == 4 and implicit.shape[0] == 1
    assert implicit.shape[2] == 1 and implicit.shape[3] == 1
    return implicit


# ----------------------------------------------------------------------------
# Fused consumer kernel:  y = x + implicit  (broadcast over N, H, W)
# x is viewed as (N*C, H*W); the bias is a (N*C, 1) column broadcast across
# the H*W lanes inside the kernel body.
# ----------------------------------------------------------------------------
def _implicit_a_add_kernel(bias_ref, x_ref, o_ref):
    # bias_ref: (tile_rows, 1), x_ref/o_ref: (tile_rows, HW)
    o_ref[...] = x_ref[...] + bias_ref[...]


def _pick_tile_rows(rows: int, hw: int, itemsize: int,
                    vmem_budget_bytes: int = 4 * 1024 * 1024) -> int:
    """Largest convenient row tile: multiple of 8, divides rows, fits budget."""
    if rows <= 8:
        return rows  # full-array block (always legal)
    for cand in (2048, 1024, 512, 256, 128, 64, 32, 16, 8):
        if cand <= rows and rows % cand == 0 and cand * hw * itemsize <= vmem_budget_bytes:
            return cand
    return rows  # fall back to a single full-array block


def implicit_a_add(x: jax.Array, implicit: jax.Array) -> jax.Array:
    """Fused ImplicitA application: x (N, C, H, W) + implicit (1, C, 1, 1)."""
    N, C, H, W = x.shape
    assert implicit.shape == (1, C, 1, 1)

    rows = N * C
    hw = H * W

    # Metadata-only view of x in its native NCHW order: rows = N*C, lanes = H*W.
    x2d = x.reshape(rows, hw)

    # Per-row bias column (tiny: N*C elements), pre-cast to activation dtype.
    bias = jnp.broadcast_to(
        implicit.reshape(1, C).astype(x.dtype), (N, C)
    ).reshape(rows, 1)

    tile_rows = _pick_tile_rows(rows, hw, jnp.dtype(x.dtype).itemsize)
    grid = (rows // tile_rows,)

    out2d = pl.pallas_call(
        _implicit_a_add_kernel,
        out_shape=jax.ShapeDtypeStruct((rows, hw), x.dtype),
        grid=grid,
        in_specs=[
            pl.BlockSpec((tile_rows, 1), lambda i: (i, 0)),   # bias column
            pl.BlockSpec((tile_rows, hw), lambda i: (i, 0)),  # activation tile
        ],
        out_specs=pl.BlockSpec((tile_rows, hw), lambda i: (i, 0)),
        compiler_params=pltpu.CompilerParams(
            dimension_semantics=("parallel",),
        ),
    )(bias, x2d)

    return out2d.reshape(N, C, H, W)


# ----------------------------------------------------------------------------
# Parameter init (stand-in for nn.init.normal_(std=0.02) on zeros(1, C, 1, 1))
# ----------------------------------------------------------------------------
def init_implicit_a_params(key: jax.Array, channel: int, dtype=jnp.float32) -> jax.Array:
    return (0.02 * jax.random.normal(key, (1, channel, 1, 1))).astype(dtype)


if __name__ == "__main__":
    channel = 4
    N, H, W = 2, 16, 16

    key = jax.random.PRNGKey(0)
    k_param, k_x = jax.random.split(key)

    implicit = init_implicit_a_params(k_param, channel)

    # --- Module forward semantics: returns the parameter itself ------------
    param_out = implicit_a_forward(implicit)
    assert param_out.shape == (1, channel, 1, 1)
    assert param_out.dtype == implicit.dtype
    assert bool(jnp.array_equal(param_out, implicit)), "ImplicitA forward mismatch"

    # --- Fused consumer kernel: x + implicit (how ImplicitA is used) -------
    x = jax.random.normal(k_x, (N, channel, H, W), dtype=jnp.float32)
    y = implicit_a_add(x, implicit)
    y = jax.block_until_ready(y)

    ref = x + implicit  # XLA reference broadcast-add
    assert y.shape == x.shape and y.dtype == x.dtype
    assert bool(jnp.allclose(y, ref, atol=1e-6, rtol=1e-6)), "fused add mismatch"

    print("KERNEL_OK")
</pallas_src>

<mosaic_0001>
module attributes {stable_mosaic.version = 11 : i64} {
  func.func @_implicit_a_add_kernel(%arg0: i32, %arg1: memref<8x1xf32, #tpu.memory_space<vmem>>, %arg2: memref<8x256xf32, #tpu.memory_space<vmem>>, %arg3: memref<8x256xf32, #tpu.memory_space<vmem>>) attributes {dimension_semantics = [#tpu.dimension_semantics<parallel>], iteration_bounds = array<i64: 1>, scalar_prefetch = 0 : i64, scratch_operands = 0 : i64, tpu.core_type = #tpu.core_type<tc>, window_params = [{transform_indices = @transform_0, window_bounds = array<i64: 8, 1>}, {transform_indices = @transform_1, window_bounds = array<i64: 8, 256>}, {transform_indices = @transform_2, window_bounds = array<i64: 8, 256>}]} {
    %c0 = arith.constant 0 : index
    %c0_0 = arith.constant 0 : index
    %0 = vector.load %arg2[%c0, %c0_0] : memref<8x256xf32, #tpu.memory_space<vmem>>, vector<8x256xf32>
    %c0_1 = arith.constant 0 : index
    %c0_2 = arith.constant 0 : index
    %1 = vector.load %arg1[%c0_1, %c0_2] : memref<8x1xf32, #tpu.memory_space<vmem>>, vector<8x1xf32>
    %2 = vector.broadcast %1 : vector<8x1xf32> to vector<8x256xf32>
    %3 = arith.addf %0, %2 : vector<8x256xf32>
    %c0_3 = arith.constant 0 : index
    %c0_4 = arith.constant 0 : index
    %4 = vector.load %arg3[%c0_3, %c0_4] : memref<8x256xf32, #tpu.memory_space<vmem>>, vector<8x256xf32>
    tpu.vector_store %arg3[%c0_3, %c0_4], %3 {strides = array<i32>} : memref<8x256xf32, #tpu.memory_space<vmem>>, vector<8x256xf32>,
    return
  }
  func.func @transform_0(%arg0: i32) -> (i32, i32) {
    %c0_i32 = arith.constant 0 : i32
    %c0_i32_0 = arith.constant 0 : i32
    return %arg0, %c0_i32 : i32, i32
  }
  func.func @transform_1(%arg0: i32) -> (i32, i32) {
    %c0_i32 = arith.constant 0 : i32
    %c0_i32_0 = arith.constant 0 : i32
    return %arg0, %c0_i32 : i32, i32
  }
  func.func @transform_2(%arg0: i32) -> (i32, i32) {
    %c0_i32 = arith.constant 0 : i32
    %c0_i32_0 = arith.constant 0 : i32
    return %arg0, %c0_i32 : i32, i32
  }
}

</mosaic_0001>

<bundles_post_ra>
// kernel: tpu_custom_call.1
= control target key start
LH: loop header
LB: loop body
LE: loop exit
PB: predicated region body
PF: predicated region fallthrough
CT: control target
= control target key end

     0   :  { %7 = vsyncpa [#allocation3], 0  ;;  %s138_s0 = inlined_call_operand.vmem [shape: f32[8,1], index: 0, kind: input, shape index: {}]   ;;  %s139_s1 = inlined_call_operand.hbm [shape: f32[8,256], index: 1, kind: input, shape index: {}]   ;;  %s140_s2 = inlined_call_operand.hbm [shape: f32[8,256], index: 2, kind: output, shape index: {}]  }
   0x1   :  { %8 = vsyncpa [#allocation4], 0  ;;  %s16_s11 = sshll.u32 %s139_s1, 4  ;;  %s111_s12 = smov [#allocation2]   ;;  %s17_s11 = int_to_ptr.hbm [resolvable:$true] %s16_s11 }
   0x2   :  { %s18_s13 = sshll.u32 %s111_s12, 4  ;;  %s19_s13 = int_to_ptr.vmem [resolvable:$true] %s18_s13 }
   0x3   :  { %21 = dma.hbm_to_vmem [thread:$0]  %s17_s11, 256, %s19_s13, [#allocation3]  }
   0x4   :  { %107 = dma.done.wait [#allocation3], 256  }
   0x5   :  { %108 = vsyncadd [#allocation3], 4294967040  ;;  %v112_v0 = vmov 0   ;;  %v28_v1 = vld [vmem:[%s138_s0] sm:$0xff]  ;;  %v27_v3 = vld [vmem:[#allocation2 + $0x8] sm:$0xff]  ;;  %s113_s16 = smov [#allocation5]  }
   0x6   :  { %58 = vset.pattern.permute.xlu0 %v112_v0  ;;  %v26_v2 = vld [vmem:[#allocation2] sm:$0xff]  ;;  %s43_s17 = sshll.u32 %s113_s16, 4  ;;  %s45_s19 = sshll.u32 %s140_s2, 4  ;;  %s44_s17 = int_to_ptr.vmem [resolvable:$true] %s43_s17  ;;  %s46_s19 = int_to_ptr.hbm [resolvable:$true] %s45_s19 }
   0x7   :  { %31 = vperm.xlu0 %58, %v28_v1  }
  0x79   :  { %v32_v4 = vpop.permute.xlu0 %31 }
  0x7a   :  { %v34_v5 = vadd.f32 %v32_v4, %v26_v2  ;;  %v35_v6 = vadd.f32 %v32_v4, %v27_v3 }
  0x7c   :  { %36 = vst [vmem:[#allocation5] sm:$0xff] %v34_v5 }
  0x7d   :  { %37 = vst [vmem:[#allocation5 + $0x8] sm:$0xff] %v35_v6 }
  0x7e   :  { %48 = dma.vmem_to_hbm [thread:$0]  %s44_s17, 256, %s46_s19, [#allocation4]  }
  0x7f   :  { %109 = dma.done.wait [#allocation4], 256  }
  0x80   :  { %110 = vsyncadd [#allocation4], 4294967040 }
  0x81   :  { %53 = vsyncpa [#allocation3], 1 }
  0x82   :  { %54 = vsyncpa [#allocation4], 1 }

</bundles_post_ra>
